<compile_context>
chip_gen: v7x
topology: tpu7x:2x2x1
jax: 0.10.0
libtpu: 0.0.40
codegen_flags: <defaults>
</compile_context>

<pallas_src>
import functools

import jax
import jax.numpy as jnp
from jax.experimental import pallas as pl
from jax.experimental.pallas import tpu as pltpu


def _frn_kernel(x_ref, g_ref, b_ref, t_ref, o_ref, *, eps, inv_hw, hw,
                mask_tail):
    # x_ref: (block_rows, hw) in input dtype; g/b/t_ref: (block_rows, 1) f32.
    xf = x_ref[...].astype(jnp.float32)
    sq = xf * xf
    if mask_tail:
        # Last lane group is physically padded to 128 lanes; keep any padding
        # lanes out of the reduction (only emitted when hw % 128 != 0).
        lane = jax.lax.broadcasted_iota(jnp.int32, sq.shape, sq.ndim - 1)
        sq = jnp.where(lane < hw, sq, 0.0)
    nu2 = jnp.sum(sq, axis=-1, keepdims=True) * inv_hw   # mean over true H*W
    scale = jax.lax.rsqrt(nu2 + eps)                      # EUP slot (~free)

    # Re-load x so the f32 cast fuses into this pass instead of keeping a
    # full-tile f32 value live across the reduction above.
    xn = x_ref[...].astype(jnp.float32) * scale
    y = jnp.maximum(g_ref[...] * xn + b_ref[...], t_ref[...])
    o_ref[...] = y.astype(o_ref.dtype)


def _vmem_capacity_bytes():
    try:
        info = pltpu.get_tpu_info()
        cap = getattr(info, "vmem_capacity_bytes", None)
        if cap:
            return int(cap)
    except Exception:
        pass
    return 64 * 1024 * 1024          # conservative default (v7x per-TC VMEM)


def _vmem_budget(cap):
    """Returns (vmem_limit_bytes, target_tile_bytes) for this generation."""
    if cap >= 96 * 1024 * 1024:      # v5e / v6e: 128 MiB physical VMEM
        return 64 * 1024 * 1024, 7 * 1024 * 1024
    # v7x (64 MiB per TensorCore) or unknown: smaller tiles, headroom kept.
    return 44 * 1024 * 1024, 4 * 1024 * 1024


def _choose_block_rows(rows, row_bytes, target_tile_bytes):
    """block_rows: multiple of 8 (or == rows). Prefers exact divisors of rows
    with an even step count (v7x megacore balance) and >= 4 grid steps."""
    cand = max(8, (target_tile_bytes // max(row_bytes, 1)) // 8 * 8)
    if rows >= 32:
        cand = min(cand, max(8, (rows // 4) // 8 * 8))
    if cand >= rows:
        return rows                  # one block covering the full row extent
    best = None
    for d in range(cand, 7, -8):
        if rows % d == 0:
            if (rows // d) % 2 == 0:
                return d             # exact divisor, even number of steps
            if best is None:
                best = d             # exact divisor, odd step count
    return best if best is not None else cand   # ragged grid via pl.cdiv


def frn_reference(x, gamma, beta, tau, eps=1e-6):
    xf = x.astype(jnp.float32)
    nu2 = jnp.mean(xf * xf, axis=(2, 3), keepdims=True)
    xn = xf * jax.lax.rsqrt(nu2 + eps)
    return jnp.maximum(gamma.astype(jnp.float32) * xn
                       + beta.astype(jnp.float32),
                       tau.astype(jnp.float32)).astype(x.dtype)


def frn_forward(x, gamma, beta, tau, eps=1e-6, block_rows=None):
    """FRN forward.

    Args:
      x:     (N, C, H, W) input, NCHW (matches the PyTorch module). Any float
             dtype; HBM traffic stays in this dtype (bf16 halves it).
      gamma: (1, C, 1, 1) scale.
      beta:  (1, C, 1, 1) shift.
      tau:   (1, C, 1, 1) threshold.
    Returns:
      (N, C, H, W) output, same dtype as x.
    """
    N, C, H, W = x.shape
    rows = N * C
    hw = H * W

    x2d = x.reshape(rows, hw)        # free: contiguous NCHW reshape

    def expand(p):
        return (jnp.broadcast_to(p.reshape(1, C), (N, C))
                .reshape(rows, 1).astype(jnp.float32))

    g2, b2, t2 = expand(gamma), expand(beta), expand(tau)

    itemsize = jnp.dtype(x.dtype).itemsize
    row_bytes = hw * itemsize
    cap = _vmem_capacity_bytes()
    vmem_limit, target_tile_bytes = _vmem_budget(cap)

    # VMEM sanity check for the smallest legal tile (8 rows): double-buffered
    # in + out tiles plus a transient f32 tile, with ~1 MiB slack.
    min_need = 8 * hw * (4 * itemsize + 4) + (1 << 20)
    if min_need > vmem_limit:
        vmem_limit = min(min_need + (4 << 20), int(cap * 0.9))
    if min_need > vmem_limit:
        # TODO(synk): add an H*W-split (two-pass nu2) Pallas kernel for
        # extreme spatial sizes; fall back to plain XLA (correct, mem-bound).
        return frn_reference(x, gamma, beta, tau, eps)

    if block_rows is None:
        block_rows = _choose_block_rows(rows, row_bytes, target_tile_bytes)
    else:
        assert block_rows == rows or block_rows % 8 == 0, (
            "block_rows must be a multiple of 8 or equal to N*C")

    grid = (pl.cdiv(rows, block_rows),)
    kernel = functools.partial(_frn_kernel, eps=float(eps), inv_hw=1.0 / hw,
                               hw=hw, mask_tail=(hw % 128 != 0))

    out2d = pl.pallas_call(
        kernel,
        out_shape=jax.ShapeDtypeStruct((rows, hw), x.dtype),
        grid=grid,
        in_specs=[
            pl.BlockSpec((block_rows, hw), lambda i: (i, 0)),
            pl.BlockSpec((block_rows, 1), lambda i: (i, 0)),
            pl.BlockSpec((block_rows, 1), lambda i: (i, 0)),
            pl.BlockSpec((block_rows, 1), lambda i: (i, 0)),
        ],
        out_specs=pl.BlockSpec((block_rows, hw), lambda i: (i, 0)),
        compiler_params=pltpu.CompilerParams(
            dimension_semantics=("parallel",),
            vmem_limit_bytes=int(vmem_limit),
        ),
    )(x2d, g2, b2, t2)

    return out2d.reshape(N, C, H, W)


if __name__ == "__main__":
    key = jax.random.PRNGKey(0)
    keys = jax.random.split(key, 10)

    def make_params(k, C):
        kg, kb, kt = jax.random.split(k, 3)
        gamma = 1.0 + 0.1 * jax.random.normal(kg, (1, C, 1, 1), jnp.float32)
        beta = 0.1 * jax.random.normal(kb, (1, C, 1, 1), jnp.float32)
        tau = 0.1 * jax.random.normal(kt, (1, C, 1, 1), jnp.float32)
        return gamma, beta, tau

    def check(out, ref, atol, rtol, msg):
        assert out.shape == ref.shape, msg + " (shape)"
        assert jnp.allclose(out.astype(jnp.float32), ref.astype(jnp.float32),
                            atol=atol, rtol=rtol), msg

    # Case 1: lane-aligned spatial (16x16 = 256), f32.
    N, C, H, W = 2, 4, 16, 16
    x = jax.random.normal(keys[0], (N, C, H, W), dtype=jnp.float32)
    gamma, beta, tau = make_params(keys[1], C)
    out = jax.block_until_ready(frn_forward(x, gamma, beta, tau))
    check(out, frn_reference(x, gamma, beta, tau), 1e-5, 1e-5, "f32 mismatch")

    # Case 2: non-128-multiple spatial (7x7 = 49) and rows not multiple of 8.
    N2, C2, H2, W2 = 2, 5, 7, 7
    x2 = jax.random.normal(keys[2], (N2, C2, H2, W2), dtype=jnp.float32)
    g2, b2, t2 = make_params(keys[3], C2)
    out2 = jax.block_until_ready(frn_forward(x2, g2, b2, t2))
    check(out2, frn_reference(x2, g2, b2, t2), 1e-5, 1e-5, "padded mismatch")

    # Case 3: bf16 end-to-end (HBM traffic in bf16, f32 math in-kernel).
    x3 = x.astype(jnp.bfloat16)
    out3 = jax.block_until_ready(frn_forward(x3, gamma, beta, tau))
    check(out3, frn_reference(x3, gamma, beta, tau), 1e-2, 1e-2,
          "bf16 mismatch")

    # Case 4: multi-step grid (rows=64 -> 4 steps), non-aligned hw (9x9 = 81).
    N4, C4, H4, W4 = 8, 8, 9, 9
    x4 = jax.random.normal(keys[4], (N4, C4, H4, W4), dtype=jnp.float32)
    g4, b4, t4 = make_params(keys[5], C4)
    out4 = jax.block_until_ready(frn_forward(x4, g4, b4, t4))
    check(out4, frn_reference(x4, g4, b4, t4), 1e-5, 1e-5, "grid mismatch")

    # Case 5: ragged grid (rows=20, explicit block_rows=8 -> 3 steps, last
    # block partially out of bounds).
    N5, C5, H5, W5 = 4, 5, 8, 8
    x5 = jax.random.normal(keys[6], (N5, C5, H5, W5), dtype=jnp.float32)
    g5, b5, t5 = make_params(keys[7], C5)
    out5 = jax.block_until_ready(frn_forward(x5, g5, b5, t5, block_rows=8))
    check(out5, frn_reference(x5, g5, b5, t5), 1e-5, 1e-5, "ragged mismatch")

    print("KERNEL_OK")
</pallas_src>

<mosaic_0001>
module attributes {stable_mosaic.version = 11 : i64} {
  func.func @_frn_kernel(%arg0: i32, %arg1: memref<8x256xf32, #tpu.memory_space<vmem>>, %arg2: memref<8x1xf32, #tpu.memory_space<vmem>>, %arg3: memref<8x1xf32, #tpu.memory_space<vmem>>, %arg4: memref<8x1xf32, #tpu.memory_space<vmem>>, %arg5: memref<8x256xf32, #tpu.memory_space<vmem>>) attributes {dimension_semantics = [#tpu.dimension_semantics<parallel>], iteration_bounds = array<i64: 1>, scalar_prefetch = 0 : i64, scratch_operands = 0 : i64, tpu.core_type = #tpu.core_type<tc>, window_params = [{transform_indices = @transform_0, window_bounds = array<i64: 8, 256>}, {transform_indices = @transform_1, window_bounds = array<i64: 8, 1>}, {transform_indices = @transform_2, window_bounds = array<i64: 8, 1>}, {transform_indices = @transform_3, window_bounds = array<i64: 8, 1>}, {transform_indices = @transform_4, window_bounds = array<i64: 8, 256>}]} {
    %c0 = arith.constant 0 : index
    %c0_0 = arith.constant 0 : index
    %0 = vector.load %arg1[%c0, %c0_0] : memref<8x256xf32, #tpu.memory_space<vmem>>, vector<8x256xf32>
    %1 = arith.mulf %0, %0 : vector<8x256xf32>
    %cst = arith.constant dense<0.000000e+00> : vector<8xf32>
    %2 = vector.multi_reduction <add>, %1, %cst [1] : vector<8x256xf32> to vector<8xf32>
    %3 = vector.shape_cast %2 : vector<8xf32> to vector<8x1xf32>
    %cst_1 = arith.constant 3.906250e-03 : f32
    %4 = vector.broadcast %cst_1 : f32 to vector<8x1xf32>
    %5 = arith.mulf %3, %4 : vector<8x1xf32>
    %cst_2 = arith.constant 9.99999997E-7 : f32
    %6 = vector.broadcast %cst_2 : f32 to vector<8x1xf32>
    %7 = arith.addf %5, %6 : vector<8x1xf32>
    %8 = math.rsqrt %7 : vector<8x1xf32>
    %c0_3 = arith.constant 0 : index
    %c0_4 = arith.constant 0 : index
    %9 = vector.load %arg1[%c0_3, %c0_4] : memref<8x256xf32, #tpu.memory_space<vmem>>, vector<8x256xf32>
    %10 = vector.broadcast %8 : vector<8x1xf32> to vector<8x256xf32>
    %11 = arith.mulf %9, %10 : vector<8x256xf32>
    %c0_5 = arith.constant 0 : index
    %c0_6 = arith.constant 0 : index
    %12 = vector.load %arg2[%c0_5, %c0_6] : memref<8x1xf32, #tpu.memory_space<vmem>>, vector<8x1xf32>
    %13 = vector.broadcast %12 : vector<8x1xf32> to vector<8x256xf32>
    %14 = arith.mulf %13, %11 : vector<8x256xf32>
    %c0_7 = arith.constant 0 : index
    %c0_8 = arith.constant 0 : index
    %15 = vector.load %arg3[%c0_7, %c0_8] : memref<8x1xf32, #tpu.memory_space<vmem>>, vector<8x1xf32>
    %16 = vector.broadcast %15 : vector<8x1xf32> to vector<8x256xf32>
    %17 = arith.addf %14, %16 : vector<8x256xf32>
    %c0_9 = arith.constant 0 : index
    %c0_10 = arith.constant 0 : index
    %18 = vector.load %arg4[%c0_9, %c0_10] : memref<8x1xf32, #tpu.memory_space<vmem>>, vector<8x1xf32>
    %19 = vector.broadcast %18 : vector<8x1xf32> to vector<8x256xf32>
    %20 = arith.maximumf %17, %19 : vector<8x256xf32>
    %c0_11 = arith.constant 0 : index
    %c0_12 = arith.constant 0 : index
    %21 = vector.load %arg5[%c0_11, %c0_12] : memref<8x256xf32, #tpu.memory_space<vmem>>, vector<8x256xf32>
    tpu.vector_store %arg5[%c0_11, %c0_12], %20 {strides = array<i32>} : memref<8x256xf32, #tpu.memory_space<vmem>>, vector<8x256xf32>,
    return
  }
  func.func @transform_0(%arg0: i32) -> (i32, i32) {
    %c0_i32 = arith.constant 0 : i32
    %c0_i32_0 = arith.constant 0 : i32
    return %arg0, %c0_i32 : i32, i32
  }
  func.func @transform_1(%arg0: i32) -> (i32, i32) {
    %c0_i32 = arith.constant 0 : i32
    %c0_i32_0 = arith.constant 0 : i32
    return %arg0, %c0_i32 : i32, i32
  }
  func.func @transform_2(%arg0: i32) -> (i32, i32) {
    %c0_i32 = arith.constant 0 : i32
    %c0_i32_0 = arith.constant 0 : i32
    return %arg0, %c0_i32 : i32, i32
  }
  func.func @transform_3(%arg0: i32) -> (i32, i32) {
    %c0_i32 = arith.constant 0 : i32
    %c0_i32_0 = arith.constant 0 : i32
    return %arg0, %c0_i32 : i32, i32
  }
  func.func @transform_4(%arg0: i32) -> (i32, i32) {
    %c0_i32 = arith.constant 0 : i32
    %c0_i32_0 = arith.constant 0 : i32
    return %arg0, %c0_i32 : i32, i32
  }
}

</mosaic_0001>

<bundles_post_ra>
// kernel: tpu_custom_call.1
= control target key start
LH: loop header
LB: loop body
LE: loop exit
PB: predicated region body
PF: predicated region fallthrough
CT: control target
= control target key end

     0   :  { %v100_v5 = vmov 0   ;;  %s154_s0 = inlined_call_operand.vmem [shape: f32[8,256], index: 0, kind: input, shape index: {}]   ;;  %s155_s1 = inlined_call_operand.vmem [shape: f32[8,1], index: 1, kind: input, shape index: {}]   ;;  %s156_s2 = inlined_call_operand.vmem [shape: f32[8,1], index: 2, kind: input, shape index: {}]   ;;  %s157_s3 = inlined_call_operand.vmem [shape: f32[8,1], index: 3, kind: input, shape index: {}]   ;;  %s158_s4 = inlined_call_operand.hbm [shape: f32[8,256], index: 4, kind: output, shape index: {}]  }
   0x1   :  { %v18_v0 = vld [vmem:[%s154_s0] sm:$0xff]  ;;  %v19_v1 = vld [vmem:[%s154_s0 + $0x8] sm:$0xff]  ;;  %73 = vset.pattern.permute.xlu1 %v100_v5  ;;  %72 = vset.pattern.permute.xlu0 %v100_v5 }
   0x2   :  { %v38_v2 = vld [vmem:[%s156_s2] sm:$0xff]  ;;  %v20_v3 = vmul.f32 %v18_v0, %v18_v0  ;;  %v21_v4 = vmul.f32 %v19_v1, %v19_v1 }
   0x3   :  { %9 = vsyncpa [#allocation3], 0  ;;  %41 = vperm.xlu1 %73, %v38_v2   ;;  %v46_v7 = vld [vmem:[%s157_s3] sm:$0xff]  ;;  %s101_s2 = smov [#allocation2]  }
   0x4   :  { %v22_v6 = vadd.f32 %v21_v4, %v20_v3  ;;  %v30_v8 = vld [vmem:[%s155_s1] sm:$0xff]  ;;  %s62_s3 = sshll.u32 %s101_s2, 4  ;;  %s63_s3 = int_to_ptr.vmem [resolvable:$true] %s62_s3 }
   0x5   :  { %s76_s1 = scalar_lea.vmem %s63_s3, 256  ;;  %p81_p1 = scmp.lt.s32.totalorder %s63_s3, %s63_s3 }
   0x6   :  { %23 = vadd.xlane.f32.xlu0 %v22_v6  ;;  %p77_p0 = scmp.ne.s32.totalorder %s63_s3, %s76_s1  ;;  %p82_p2 = scmp.lt.s32.totalorder %s76_s1, %s76_s1 }
   0x7   :  { %49 = vperm.xlu1 %73, %v46_v7  }
   0x8   :  { %p83_p3 = por %p82_p2, %p81_p1 }
   0xa   :  { %p84_p4 = pnand %p83_p3, %p77_p0 }
  0x1c   :  { %33 = vperm.xlu0 %72, %v30_v8  }
  0x82   :  { %v42_v13 = vpop.permute.xlu1 %41 }
  0x86   :  { %v50_v21 = vpop.permute.xlu1 %49 }
  0x93   :  { %v24_v9 = vpop.xlane.xlu0 %23 }
  0x94   :  { %v25_v10 = vmul.f32 0.00390625, %v24_v9 }
  0x96   :  { %v26_v11 = vadd.f32 1e-06, %v25_v10 }
  0x98   :  { %74 = vrsqrt.f32 %v26_v11 }
  0x9b   :  { %v34_v14 = vpop.permute.xlu0 %33 }
  0xa2   :  { %v75_v12 = vpop.eup %74 }
  0xa3   :  { %v28_v15 = vmul.f32 %v75_v12, %v18_v0  ;;  %v29_v16 = vmul.f32 %v75_v12, %v19_v1 }
  0xa5   :  { %v36_v17 = vmul.f32 %v34_v14, %v28_v15  ;;  %v37_v18 = vmul.f32 %v34_v14, %v29_v16 }
  0xa7   :  { %v44_v19 = vadd.f32 %v42_v13, %v36_v17  ;;  %v45_v20 = vadd.f32 %v42_v13, %v37_v18 }
  0xa9   :  { %v52_v22 = vmax.f32 %v44_v19, %v50_v21  ;;  %v53_v23 = vmax.f32 %v45_v20, %v50_v21 }
  0xab   :  { %54 = vst [vmem:[#allocation2] sm:$0xff] %v52_v22  ;;  %55 = vst [vmem:[#allocation2 + $0x8] sm:$0xff] %v53_v23 }
  0xac   :  { %87 = shalt.err (!%p84_p4)
}
  0xad   :  { %s88_s26 = scalar_lea.hbm %s158_s4, 256 }
  0xae   :  { %p89_p5 = scmp.ne.s32.totalorder %s158_s4, %s88_s26  ;;  %p92_p6 = scmp.lt.u32.totalorder %s88_s26, %s158_s4 }
  0xb0   :  { %p94_p7 = pnand %p92_p6, %p89_p5 }
  0xb2   :  { %97 = shalt.err (!%p94_p7)
}
  0xb3   :  { %65 = dma.vmem_to_hbm [thread:$0]  %s63_s3, 256, %s158_s4, [#allocation3]  }
  0xb4   :  { %98 = dma.done.wait [#allocation3], 256  }
  0xb5   :  { %99 = vsyncadd [#allocation3], 4294967040 }
  0xb6   :  { %69 = vsyncpa [#allocation3], 1 }

</bundles_post_ra>
